<compile_context>
chip_gen: v6e
topology: v6e:2x2x1
jax: 0.10.0
libtpu: 0.0.40
codegen_flags: <defaults>
</compile_context>

<pallas_src>
import jax
import jax.numpy as jnp
from jax import lax
from jax.experimental import pallas as pl
from jax.experimental.pallas import tpu as pltpu

EPS = 1e-5  # nn.LayerNorm default
_INV_SQRT2 = 0.7071067811865476


# --------------------------------------------------------------------------
# In-kernel math helpers (f32)
# --------------------------------------------------------------------------
def _layernorm_f32(h, gamma, beta):
    # h: [TM, D] f32, gamma/beta: [1, D] f32
    mean = jnp.mean(h, axis=-1, keepdims=True)
    var = jnp.mean((h - mean) ** 2, axis=-1, keepdims=True)
    inv = lax.rsqrt(var + EPS)
    return (h - mean) * inv * gamma + beta


def _gelu_exact_f32(h):
    # PyTorch nn.GELU() default = exact erf-based GELU (bit-matches the spec).
    return 0.5 * h * (1.0 + lax.erf(h * jnp.float32(_INV_SQRT2)))


# --------------------------------------------------------------------------
# Kernel 1: resident weights (W1/W2 live in VMEM, single-buffered)
# --------------------------------------------------------------------------
def residual_block_resident_kernel(x_ref, w1_ref, b1_ref, g1_ref, be1_ref,
                                   w2_ref, b2_ref, g2_ref, be2_ref, o_ref):
    x = x_ref[...]
    # Cast activation to the weight dtype so bf16 weights get the bf16 MXU
    # path on GEMM1 as well (no-op for all-f32).
    xw = x.astype(w1_ref.dtype)

    # Linear 1
    h = jnp.dot(xw, w1_ref[...], preferred_element_type=jnp.float32)
    h = h + b1_ref[...].astype(jnp.float32)
    # LayerNorm 1 + exact GELU (f32 VPU/EUP math)
    h = _layernorm_f32(h, g1_ref[...].astype(jnp.float32),
                       be1_ref[...].astype(jnp.float32))
    h = _gelu_exact_f32(h)
    # Linear 2
    h = jnp.dot(h.astype(w2_ref.dtype), w2_ref[...],
                preferred_element_type=jnp.float32)
    h = h + b2_ref[...].astype(jnp.float32)
    # LayerNorm 2
    h = _layernorm_f32(h, g2_ref[...].astype(jnp.float32),
                       be2_ref[...].astype(jnp.float32))

    # Residual add in f32 on the ORIGINAL activation, cast to output dtype.
    o_ref[...] = (x.astype(jnp.float32) + h).astype(o_ref.dtype)


# --------------------------------------------------------------------------
# Kernel 2: streaming weights (W1/W2 in HBM, manual double-buffered panels)
# --------------------------------------------------------------------------
def _make_streaming_kernel(panel, n_panels):
    """W1/W2 streamed as [D, panel] column panels; statically unrolled."""

    def kernel(x_ref, w1_hbm, b1_ref, g1_ref, be1_ref,
               w2_hbm, b2_ref, g2_ref, be2_ref, o_ref,
               wbuf_ref, h1_ref, h2_ref, sem):
        x = x_ref[...]
        w_dtype = w1_hbm.dtype
        xw = x.astype(w_dtype)

        def mk_copy(src_hbm, p, slot):
            return pltpu.make_async_copy(
                src_hbm.at[:, pl.ds(p * panel, panel)],
                wbuf_ref.at[slot],
                sem.at[slot])

        pending = [None, None]
        c0 = mk_copy(w1_hbm, 0, 0)
        c0.start()
        pending[0] = c0

        # ---- GEMM1: x @ W1, streamed over column panels of W1 -------------
        for p in range(n_panels):
            slot = p & 1
            pending[slot].wait()
            if p + 1 < n_panels:
                nxt = mk_copy(w1_hbm, p + 1, 1 - slot)
            else:
                # Cross-prefetch the first W2 panel behind the last W1 GEMM
                # and the LN1/GELU phase.
                nxt = mk_copy(w2_hbm, 0, 1 - slot)
            nxt.start()
            pending[1 - slot] = nxt
            h1_ref[:, p * panel:(p + 1) * panel] = jnp.dot(
                xw, wbuf_ref[slot], preferred_element_type=jnp.float32)

        # ---- Bias 1 + LayerNorm 1 + GELU on the full row -------------------
        h = h1_ref[...] + b1_ref[...].astype(jnp.float32)
        h = _layernorm_f32(h, g1_ref[...].astype(jnp.float32),
                           be1_ref[...].astype(jnp.float32))
        h = _gelu_exact_f32(h)
        hw = h.astype(w_dtype)

        # ---- GEMM2: h @ W2, streamed over column panels of W2 -------------
        for p in range(n_panels):
            slot = (n_panels + p) & 1
            pending[slot].wait()
            if p + 1 < n_panels:
                nxt = mk_copy(w2_hbm, p + 1, 1 - slot)
                nxt.start()
                pending[1 - slot] = nxt
            h2_ref[:, p * panel:(p + 1) * panel] = jnp.dot(
                hw, wbuf_ref[slot], preferred_element_type=jnp.float32)

        # ---- Bias 2 + LayerNorm 2 + residual --------------------------------
        h2 = h2_ref[...] + b2_ref[...].astype(jnp.float32)
        h2 = _layernorm_f32(h2, g2_ref[...].astype(jnp.float32),
                            be2_ref[...].astype(jnp.float32))
        o_ref[...] = (x.astype(jnp.float32) + h2).astype(o_ref.dtype)

    return kernel


# --------------------------------------------------------------------------
# Wrapper
# --------------------------------------------------------------------------
def _round_up(n, m):
    return (n + m - 1) // m * m


def _vmem_capacity_bytes():
    try:
        info = pltpu.get_tpu_info()
        cap = getattr(info, "vmem_capacity_bytes", None)
        if cap:
            return int(cap)
    except Exception:
        pass
    return 64 * 1024 * 1024  # conservative (v7x per-TC)


def _const_spec(shape):
    """BlockSpec with a constant index_map, single-buffered (pl.Buffered(1))."""
    index_map = lambda i: tuple(0 for _ in shape)
    buffered = getattr(pl, "Buffered", None)
    if buffered is not None:
        try:
            return pl.BlockSpec(shape, index_map, pipeline_mode=buffered(1))
        except TypeError:  # older BlockSpec without pipeline_mode
            pass
    return pl.BlockSpec(shape, index_map)


def residual_block(x, params, *, block_rows=None, force_streaming=False,
                   panel_cols=None):
    """x: [..., D]; params: dict of weights (see init_params)."""
    orig_shape = x.shape
    dim = orig_shape[-1]
    x2d = x.reshape(-1, dim)
    n = x2d.shape[0]

    x_bytes = x.dtype.itemsize
    w_dtype = params["w1"].dtype
    w_bytes = jnp.dtype(w_dtype).itemsize

    # ---- generation-aware VMEM budget --------------------------------------
    vmem_cap = _vmem_capacity_bytes()
    headroom = 16 * 1024 * 1024
    budget = max(vmem_cap - headroom, 16 * 1024 * 1024)

    # dtype-aware sublane packing for the row tile (8 f32 / 16 bf16 / 32 int8).
    sublane = {4: 8, 2: 16, 1: 32}.get(x_bytes, 8)

    if block_rows is None:
        # 128 MiB parts (v5e/v6e) take a bigger row tile; 64 MiB (v7x) keeps 256.
        block_rows = 512 if vmem_cap >= 96 * 1024 * 1024 else 256
    tm = _round_up(min(block_rows, _round_up(n, sublane)), sublane)

    small_param_bytes = 6 * dim * w_bytes           # b1,g1,be1,b2,g2,be2 (resident)
    resident_w_bytes = 2 * dim * dim * w_bytes       # single-buffered W1+W2

    def _io_bytes(tm_):
        # x/out tiles (double-buffered) + f32 intermediates / internal scratch.
        return 2 * 2 * tm_ * dim * x_bytes + 2 * tm_ * dim * 4

    def _resident_bytes(tm_):
        return resident_w_bytes + small_param_bytes + _io_bytes(tm_)

    # ---- choose resident vs. streaming --------------------------------------
    use_streaming = bool(force_streaming)
    if not use_streaming and _resident_bytes(tm) > budget and dim % 128 == 0:
        use_streaming = True

    panel = None
    if use_streaming:
        candidates = ([panel_cols] if panel_cols else []) + [512, 384, 256, 128]
        for cand in candidates:
            if cand and cand % 128 == 0 and cand <= dim and dim % cand == 0:
                panel = cand
                break
        if panel is None:
            use_streaming = False  # TODO(synk): dims not divisible by 128.

    if use_streaming:
        def _stream_bytes(tm_):
            return (2 * dim * panel * w_bytes + small_param_bytes
                    + 2 * 2 * tm_ * dim * x_bytes + 2 * tm_ * dim * 4)
        while tm > sublane and _stream_bytes(tm) > budget:
            tm = max(sublane, _round_up(tm // 2, sublane))
        est_vmem = _stream_bytes(tm)
    else:
        while tm > sublane and _resident_bytes(tm) > budget:
            tm = max(sublane, _round_up(tm // 2, sublane))
        est_vmem = _resident_bytes(tm)

    # ---- pad rows to a whole number of tiles --------------------------------
    n_pad = _round_up(n, tm)
    if n_pad != n:
        # Padded rows go through LN safely (var=0 -> rsqrt(eps), finite) and are
        # dropped at the end.
        x2d = jnp.pad(x2d, ((0, n_pad - n), (0, 0)))
    grid = (n_pad // tm,)
    n_tiles = grid[0]

    row = lambda v: v.reshape(1, dim)

    # ---- advisory cost estimate ---------------------------------------------
    if use_streaming:
        w_traffic = 2 * dim * dim * w_bytes * n_tiles
    else:
        w_traffic = 2 * dim * dim * w_bytes
    cost = pl.CostEstimate(
        flops=4 * n_pad * dim * dim,          # two (TM,D)x(D,D) GEMMs over all tiles
        transcendentals=n_pad * dim,          # erf
        bytes_accessed=(2 * n_pad * dim * x_bytes + w_traffic
                        + small_param_bytes))

    # ---- scoped VMEM limit: never above the physical per-core capacity -----
    vmem_limit = None
    default_scoped = 16 * 1024 * 1024  # conservative across generations
    if est_vmem + (4 << 20) > default_scoped:
        vmem_limit = min(est_vmem + (8 << 20), vmem_cap - (8 << 20))
        vmem_limit = int(max(vmem_limit, default_scoped))

    compiler_params = pltpu.CompilerParams(
        dimension_semantics=("parallel",),
        vmem_limit_bytes=vmem_limit,
    )

    x_spec = pl.BlockSpec((tm, dim), lambda i: (i, 0))
    out_spec = pl.BlockSpec((tm, dim), lambda i: (i, 0))
    small_spec = lambda: _const_spec((1, dim))

    if use_streaming:
        n_panels = dim // panel
        kernel = _make_streaming_kernel(panel, n_panels)
        w_spec = lambda: pl.BlockSpec(memory_space=pl.ANY)   # stays in HBM
        scratch_shapes = [
            pltpu.VMEM((2, dim, panel), w_dtype),   # double-buffered weight panels
            pltpu.VMEM((tm, dim), jnp.float32),     # h1 (pre-LN1 GEMM output)
            pltpu.VMEM((tm, dim), jnp.float32),     # h2 (pre-LN2 GEMM output)
            pltpu.SemaphoreType.DMA((2,)),
        ]
    else:
        kernel = residual_block_resident_kernel
        w_spec = lambda: _const_spec((dim, dim))             # VMEM-resident, 1 buffer
        scratch_shapes = []

    out = pl.pallas_call(
        kernel,
        out_shape=jax.ShapeDtypeStruct((n_pad, dim), x.dtype),
        grid_spec=pltpu.PrefetchScalarGridSpec(
            num_scalar_prefetch=0,
            grid=grid,
            in_specs=[
                x_spec,          # x   (tiled rows)
                w_spec(),        # w1
                small_spec(),    # b1
                small_spec(),    # gamma1
                small_spec(),    # beta1
                w_spec(),        # w2
                small_spec(),    # b2
                small_spec(),    # gamma2
                small_spec(),    # beta2
            ],
            out_specs=out_spec,
            scratch_shapes=scratch_shapes,
        ),
        compiler_params=compiler_params,
        cost_estimate=cost,
    )(
        x2d,
        params["w1"], row(params["b1"]), row(params["g1"]), row(params["be1"]),
        params["w2"], row(params["b2"]), row(params["g2"]), row(params["be2"]),
    )

    if n_pad != n:
        out = out[:n]
    return out.reshape(orig_shape)


# --------------------------------------------------------------------------
# Parameters + reference
# --------------------------------------------------------------------------
def init_params(key, dim, dtype=jnp.float32):
    """Synthetic parameters matching the PyTorch module shapes.

    PyTorch nn.Linear stores weight as [out, in]; we keep the kernel-friendly
    transposed form [in, out] so the kernel computes y = x @ W + b directly.
    """
    k1, k2, k3, k4 = jax.random.split(key, 4)
    bound = float(dim) ** -0.5
    return {
        "w1": jax.random.uniform(k1, (dim, dim), dtype, -bound, bound),
        "b1": jax.random.uniform(k2, (dim,), dtype, -bound, bound),
        "g1": jnp.ones((dim,), dtype),
        "be1": jnp.zeros((dim,), dtype),
        "w2": jax.random.uniform(k3, (dim, dim), dtype, -bound, bound),
        "b2": jax.random.uniform(k4, (dim,), dtype, -bound, bound),
        "g2": jnp.ones((dim,), dtype),
        "be2": jnp.zeros((dim,), dtype),
    }


def _reference(x, p):
    """Plain-JAX reference (f32 math, matmul inputs rounded like the kernel)."""
    f32 = lambda v: v.astype(jnp.float32)
    wdt = p["w1"].dtype

    def mm(a, w):
        return jnp.dot(a.astype(wdt).astype(jnp.float32), f32(w),
                       precision=lax.Precision.HIGHEST)

    def ln(h, g, b):
        m = jnp.mean(h, axis=-1, keepdims=True)
        v = jnp.mean((h - m) ** 2, axis=-1, keepdims=True)
        return (h - m) / jnp.sqrt(v + EPS) * g + b

    xf = f32(x)
    h = mm(xf, p["w1"]) + f32(p["b1"])
    h = ln(h, f32(p["g1"]), f32(p["be1"]))
    h = 0.5 * h * (1.0 + lax.erf(h / jnp.sqrt(2.0)))
    h = mm(h, p["w2"]) + f32(p["b2"])
    h = ln(h, f32(p["g2"]), f32(p["be2"]))
    return (xf + h).astype(x.dtype)


# --------------------------------------------------------------------------
# Tests
# --------------------------------------------------------------------------
if __name__ == "__main__":
    key = jax.random.PRNGKey(0)
    k1, k2, k3, k4, k5, k6, k7, k8 = jax.random.split(key, 8)

    # Test 1: spec-sized smoke test (batch=2, seq=8, dim=32), resident path.
    x = jax.random.normal(k1, (2, 8, 32), jnp.float32)
    p = init_params(k2, 32)
    out = jax.block_until_ready(residual_block(x, p))
    ref = _reference(x, p)
    assert out.shape == x.shape and out.dtype == x.dtype
    assert jnp.allclose(out, ref, atol=2e-3, rtol=2e-3), (
        float(jnp.max(jnp.abs(out - ref))))

    # Test 2: multi-tile grid + row padding (N=520), resident path.
    x2 = jax.random.normal(k3, (5, 104, 128), jnp.float32)
    p2 = init_params(k4, 128)
    out2 = jax.block_until_ready(residual_block(x2, p2))
    ref2 = _reference(x2, p2)
    assert out2.shape == x2.shape and out2.dtype == x2.dtype
    assert jnp.allclose(out2, ref2, atol=2e-3, rtol=2e-3), (
        float(jnp.max(jnp.abs(out2 - ref2))))

    # Test 3: forced weight-panel streaming path (2 panels of 128 columns),
    # exercising the manual double-buffered DMA + cross-prefetch logic.
    x3 = jax.random.normal(k5, (2, 40, 256), jnp.float32)
    p3 = init_params(k6, 256)
    out3 = jax.block_until_ready(
        residual_block(x3, p3, force_streaming=True, panel_cols=128))
    ref3 = _reference(x3, p3)
    assert out3.shape == x3.shape and out3.dtype == x3.dtype
    assert jnp.allclose(out3, ref3, atol=2e-3, rtol=2e-3), (
        float(jnp.max(jnp.abs(out3 - ref3))))

    # Test 4: bf16 weights with f32 activations (mixed-dtype bf16 MXU path).
    x4 = jax.random.normal(k7, (2, 16, 128), jnp.float32)
    p4 = init_params(k8, 128, dtype=jnp.bfloat16)
    out4 = jax.block_until_ready(residual_block(x4, p4))
    ref4 = _reference(x4, p4)
    assert out4.shape == x4.shape and out4.dtype == x4.dtype
    assert jnp.allclose(out4, ref4, atol=3e-2, rtol=3e-2), (
        float(jnp.max(jnp.abs(out4 - ref4))))

    print("KERNEL_OK")
</pallas_src>

<mosaic_0001>
module attributes {stable_mosaic.version = 11 : i64} {
  func.func @residual_block_resident_kernel(%arg0: i32, %arg1: memref<16x32xf32, #tpu.memory_space<vmem>>, %arg2: memref<32x32xf32, #tpu.memory_space<vmem>>, %arg3: memref<1x32xf32, #tpu.memory_space<vmem>>, %arg4: memref<1x32xf32, #tpu.memory_space<vmem>>, %arg5: memref<1x32xf32, #tpu.memory_space<vmem>>, %arg6: memref<32x32xf32, #tpu.memory_space<vmem>>, %arg7: memref<1x32xf32, #tpu.memory_space<vmem>>, %arg8: memref<1x32xf32, #tpu.memory_space<vmem>>, %arg9: memref<1x32xf32, #tpu.memory_space<vmem>>, %arg10: memref<16x32xf32, #tpu.memory_space<vmem>>) attributes {dimension_semantics = [#tpu.dimension_semantics<parallel>], iteration_bounds = array<i64: 1>, scalar_prefetch = 0 : i64, scratch_operands = 0 : i64, tpu.core_type = #tpu.core_type<tc>, window_params = [{transform_indices = @transform_0, window_bounds = array<i64: 16, 32>}, {pipeline_mode = #tpu.pipeline_mode<synchronous>, transform_indices = @transform_1, window_bounds = array<i64: 32, 32>}, {pipeline_mode = #tpu.pipeline_mode<synchronous>, transform_indices = @transform_2, window_bounds = array<i64: 1, 32>}, {pipeline_mode = #tpu.pipeline_mode<synchronous>, transform_indices = @transform_3, window_bounds = array<i64: 1, 32>}, {pipeline_mode = #tpu.pipeline_mode<synchronous>, transform_indices = @transform_4, window_bounds = array<i64: 1, 32>}, {pipeline_mode = #tpu.pipeline_mode<synchronous>, transform_indices = @transform_5, window_bounds = array<i64: 32, 32>}, {pipeline_mode = #tpu.pipeline_mode<synchronous>, transform_indices = @transform_6, window_bounds = array<i64: 1, 32>}, {pipeline_mode = #tpu.pipeline_mode<synchronous>, transform_indices = @transform_7, window_bounds = array<i64: 1, 32>}, {pipeline_mode = #tpu.pipeline_mode<synchronous>, transform_indices = @transform_8, window_bounds = array<i64: 1, 32>}, {transform_indices = @transform_9, window_bounds = array<i64: 16, 32>}]} {
    %c0 = arith.constant 0 : index
    %c0_0 = arith.constant 0 : index
    %0 = vector.load %arg1[%c0, %c0_0] : memref<16x32xf32, #tpu.memory_space<vmem>>, vector<16x32xf32>
    %c0_1 = arith.constant 0 : index
    %c0_2 = arith.constant 0 : index
    %1 = vector.load %arg2[%c0_1, %c0_2] : memref<32x32xf32, #tpu.memory_space<vmem>>, vector<32x32xf32>
    %cst = arith.constant dense<0.000000e+00> : vector<16x32xf32>
    %2 = tpu.matmul %0, %1, %cst {dimension_numbers = #tpu.dot_dimension_numbers<[1], [0], [0], [1], [0, 0, 1, 1], [], []>} : vector<16x32xf32>, vector<32x32xf32>, vector<16x32xf32> -> vector<16x32xf32>
    %c0_3 = arith.constant 0 : index
    %c0_4 = arith.constant 0 : index
    %3 = vector.load %arg3[%c0_3, %c0_4] : memref<1x32xf32, #tpu.memory_space<vmem>>, vector<1x32xf32>
    %4 = vector.broadcast %3 : vector<1x32xf32> to vector<16x32xf32>
    %5 = arith.addf %2, %4 : vector<16x32xf32>
    %c0_5 = arith.constant 0 : index
    %c0_6 = arith.constant 0 : index
    %6 = vector.load %arg4[%c0_5, %c0_6] : memref<1x32xf32, #tpu.memory_space<vmem>>, vector<1x32xf32>
    %c0_7 = arith.constant 0 : index
    %c0_8 = arith.constant 0 : index
    %7 = vector.load %arg5[%c0_7, %c0_8] : memref<1x32xf32, #tpu.memory_space<vmem>>, vector<1x32xf32>
    %cst_9 = arith.constant dense<0.000000e+00> : vector<16xf32>
    %8 = vector.multi_reduction <add>, %5, %cst_9 [1] : vector<16x32xf32> to vector<16xf32>
    %9 = vector.shape_cast %8 : vector<16xf32> to vector<16x1xf32>
    %cst_10 = arith.constant 3.200000e+01 : f32
    %10 = vector.broadcast %cst_10 : f32 to vector<16x1xf32>
    %11 = arith.divf %9, %10 : vector<16x1xf32>
    %12 = vector.broadcast %11 : vector<16x1xf32> to vector<16x32xf32>
    %13 = arith.subf %5, %12 : vector<16x32xf32>
    %14 = arith.mulf %13, %13 : vector<16x32xf32>
    %cst_11 = arith.constant dense<0.000000e+00> : vector<16xf32>
    %15 = vector.multi_reduction <add>, %14, %cst_11 [1] : vector<16x32xf32> to vector<16xf32>
    %16 = vector.shape_cast %15 : vector<16xf32> to vector<16x1xf32>
    %cst_12 = arith.constant 3.200000e+01 : f32
    %17 = vector.broadcast %cst_12 : f32 to vector<16x1xf32>
    %18 = arith.divf %16, %17 : vector<16x1xf32>
    %cst_13 = arith.constant 9.99999974E-6 : f32
    %19 = vector.broadcast %cst_13 : f32 to vector<16x1xf32>
    %20 = arith.addf %18, %19 : vector<16x1xf32>
    %21 = math.rsqrt %20 : vector<16x1xf32>
    %22 = vector.broadcast %11 : vector<16x1xf32> to vector<16x32xf32>
    %23 = arith.subf %5, %22 : vector<16x32xf32>
    %24 = vector.broadcast %21 : vector<16x1xf32> to vector<16x32xf32>
    %25 = arith.mulf %23, %24 : vector<16x32xf32>
    %26 = vector.broadcast %6 : vector<1x32xf32> to vector<16x32xf32>
    %27 = arith.mulf %25, %26 : vector<16x32xf32>
    %28 = vector.broadcast %7 : vector<1x32xf32> to vector<16x32xf32>
    %29 = arith.addf %27, %28 : vector<16x32xf32>
    %cst_14 = arith.constant 5.000000e-01 : f32
    %30 = vector.broadcast %cst_14 : f32 to vector<16x32xf32>
    %31 = arith.mulf %30, %29 : vector<16x32xf32>
    %cst_15 = arith.constant 0.707106769 : f32
    %32 = vector.broadcast %cst_15 : f32 to vector<16x32xf32>
    %33 = arith.mulf %29, %32 : vector<16x32xf32>
    %34 = math.erf %33 : vector<16x32xf32>
    %cst_16 = arith.constant 1.000000e+00 : f32
    %35 = vector.broadcast %cst_16 : f32 to vector<16x32xf32>
    %36 = arith.addf %35, %34 : vector<16x32xf32>
    %37 = arith.mulf %31, %36 : vector<16x32xf32>
    %c0_17 = arith.constant 0 : index
    %c0_18 = arith.constant 0 : index
    %38 = vector.load %arg6[%c0_17, %c0_18] : memref<32x32xf32, #tpu.memory_space<vmem>>, vector<32x32xf32>
    %cst_19 = arith.constant dense<0.000000e+00> : vector<16x32xf32>
    %39 = tpu.matmul %37, %38, %cst_19 {dimension_numbers = #tpu.dot_dimension_numbers<[1], [0], [0], [1], [0, 0, 1, 1], [], []>} : vector<16x32xf32>, vector<32x32xf32>, vector<16x32xf32> -> vector<16x32xf32>
    %c0_20 = arith.constant 0 : index
    %c0_21 = arith.constant 0 : index
    %40 = vector.load %arg7[%c0_20, %c0_21] : memref<1x32xf32, #tpu.memory_space<vmem>>, vector<1x32xf32>
    %41 = vector.broadcast %40 : vector<1x32xf32> to vector<16x32xf32>
    %42 = arith.addf %39, %41 : vector<16x32xf32>
    %c0_22 = arith.constant 0 : index
    %c0_23 = arith.constant 0 : index
    %43 = vector.load %arg8[%c0_22, %c0_23] : memref<1x32xf32, #tpu.memory_space<vmem>>, vector<1x32xf32>
    %c0_24 = arith.constant 0 : index
    %c0_25 = arith.constant 0 : index
    %44 = vector.load %arg9[%c0_24, %c0_25] : memref<1x32xf32, #tpu.memory_space<vmem>>, vector<1x32xf32>
    %cst_26 = arith.constant dense<0.000000e+00> : vector<16xf32>
    %45 = vector.multi_reduction <add>, %42, %cst_26 [1] : vector<16x32xf32> to vector<16xf32>
    %46 = vector.shape_cast %45 : vector<16xf32> to vector<16x1xf32>
    %cst_27 = arith.constant 3.200000e+01 : f32
    %47 = vector.broadcast %cst_27 : f32 to vector<16x1xf32>
    %48 = arith.divf %46, %47 : vector<16x1xf32>
    %49 = vector.broadcast %48 : vector<16x1xf32> to vector<16x32xf32>
    %50 = arith.subf %42, %49 : vector<16x32xf32>
    %51 = arith.mulf %50, %50 : vector<16x32xf32>
    %cst_28 = arith.constant dense<0.000000e+00> : vector<16xf32>
    %52 = vector.multi_reduction <add>, %51, %cst_28 [1] : vector<16x32xf32> to vector<16xf32>
    %53 = vector.shape_cast %52 : vector<16xf32> to vector<16x1xf32>
    %cst_29 = arith.constant 3.200000e+01 : f32
    %54 = vector.broadcast %cst_29 : f32 to vector<16x1xf32>
    %55 = arith.divf %53, %54 : vector<16x1xf32>
    %cst_30 = arith.constant 9.99999974E-6 : f32
    %56 = vector.broadcast %cst_30 : f32 to vector<16x1xf32>
    %57 = arith.addf %55, %56 : vector<16x1xf32>
    %58 = math.rsqrt %57 : vector<16x1xf32>
    %59 = vector.broadcast %48 : vector<16x1xf32> to vector<16x32xf32>
    %60 = arith.subf %42, %59 : vector<16x32xf32>
    %61 = vector.broadcast %58 : vector<16x1xf32> to vector<16x32xf32>
    %62 = arith.mulf %60, %61 : vector<16x32xf32>
    %63 = vector.broadcast %43 : vector<1x32xf32> to vector<16x32xf32>
    %64 = arith.mulf %62, %63 : vector<16x32xf32>
    %65 = vector.broadcast %44 : vector<1x32xf32> to vector<16x32xf32>
    %66 = arith.addf %64, %65 : vector<16x32xf32>
    %67 = arith.addf %0, %66 : vector<16x32xf32>
    %c0_31 = arith.constant 0 : index
    %c0_32 = arith.constant 0 : index
    %68 = vector.load %arg10[%c0_31, %c0_32] : memref<16x32xf32, #tpu.memory_space<vmem>>, vector<16x32xf32>
    tpu.vector_store %arg10[%c0_31, %c0_32], %67 {strides = array<i32>} : memref<16x32xf32, #tpu.memory_space<vmem>>, vector<16x32xf32>,
    return
  }
  func.func @transform_0(%arg0: i32) -> (i32, i32) {
    %c0_i32 = arith.constant 0 : i32
    %c0_i32_0 = arith.constant 0 : i32
    return %arg0, %c0_i32 : i32, i32
  }
  func.func @transform_1(%arg0: i32) -> (i32, i32) {
    %c0_i32 = arith.constant 0 : i32
    %c0_i32_0 = arith.constant 0 : i32
    %c0_i32_1 = arith.constant 0 : i32
    return %c0_i32, %c0_i32_0 : i32, i32
  }
  func.func @transform_2(%arg0: i32) -> (i32, i32) {
    %c0_i32 = arith.constant 0 : i32
    %c0_i32_0 = arith.constant 0 : i32
    %c0_i32_1 = arith.constant 0 : i32
    return %c0_i32, %c0_i32_0 : i32, i32
  }
  func.func @transform_3(%arg0: i32) -> (i32, i32) {
    %c0_i32 = arith.constant 0 : i32
    %c0_i32_0 = arith.constant 0 : i32
    %c0_i32_1 = arith.constant 0 : i32
    return %c0_i32, %c0_i32_0 : i32, i32
  }
  func.func @transform_4(%arg0: i32) -> (i32, i32) {
    %c0_i32 = arith.constant 0 : i32
    %c0_i32_0 = arith.constant 0 : i32
    %c0_i32_1 = arith.constant 0 : i32
    return %c0_i32, %c0_i32_0 : i32, i32
  }
  func.func @transform_5(%arg0: i32) -> (i32, i32) {
    %c0_i32 = arith.constant 0 : i32
    %c0_i32_0 = arith.constant 0 : i32
    %c0_i32_1 = arith.constant 0 : i32
    return %c0_i32, %c0_i32_0 : i32, i32
  }
  func.func @transform_6(%arg0: i32) -> (i32, i32) {
    %c0_i32 = arith.constant 0 : i32
    %c0_i32_0 = arith.constant 0 : i32
    %c0_i32_1 = arith.constant 0 : i32
    return %c0_i32, %c0_i32_0 : i32, i32
  }
  func.func @transform_7(%arg0: i32) -> (i32, i32) {
    %c0_i32 = arith.constant 0 : i32
    %c0_i32_0 = arith.constant 0 : i32
    %c0_i32_1 = arith.constant 0 : i32
    return %c0_i32, %c0_i32_0 : i32, i32
  }
  func.func @transform_8(%arg0: i32) -> (i32, i32) {
    %c0_i32 = arith.constant 0 : i32
    %c0_i32_0 = arith.constant 0 : i32
    %c0_i32_1 = arith.constant 0 : i32
    return %c0_i32, %c0_i32_0 : i32, i32
  }
  func.func @transform_9(%arg0: i32) -> (i32, i32) {
    %c0_i32 = arith.constant 0 : i32
    %c0_i32_0 = arith.constant 0 : i32
    return %arg0, %c0_i32 : i32, i32
  }
}

</mosaic_0001>

<bundles_post_ra>
// kernel: tpu_custom_call.1
= control target key start
LH: loop header
LB: loop body
LE: loop exit
PB: predicated region body
PF: predicated region fallthrough
CT: control target
= control target key end

     0   :  { %14 = vsyncpa [#allocation3], 0  ;;  %s650_s0 = inlined_call_operand.hbm [shape: f32[16,32], index: 0, kind: input, shape index: {}]   ;;  %s651_s1 = inlined_call_operand.hbm [shape: f32[32,32], index: 1, kind: input, shape index: {}]   ;;  %s652_s2 = inlined_call_operand.vmem [shape: f32[1,32], index: 2, kind: input, shape index: {}]   ;;  %s653_s3 = inlined_call_operand.vmem [shape: f32[1,32], index: 3, kind: input, shape index: {}]   ;;  %s654_s4 = inlined_call_operand.vmem [shape: f32[1,32], index: 4, kind: input, shape index: {}]   ;;  %s655_s5 = inlined_call_operand.hbm [shape: f32[32,32], index: 5, kind: input, shape index: {}]   ;;  %s656_s6 = inlined_call_operand.vmem [shape: f32[1,32], index: 6, kind: input, shape index: {}]   ;;  %s657_s7 = inlined_call_operand.vmem [shape: f32[1,32], index: 7, kind: input, shape index: {}]   ;;  %s658_s8 = inlined_call_operand.vmem [shape: f32[1,32], index: 8, kind: input, shape index: {}]   ;;  %s659_s9 = inlined_call_operand.hbm [shape: f32[16,32], index: 9, kind: output, shape index: {}]  }
   0x1   :  { %15 = vsyncpa [#allocation6], 0 }
   0x2   :  { %16 = vsyncpa [#allocation4], 0  ;;  %s530_s30 = smov [#allocation5]   ;;  %s531_s11 = smov [#allocation2]  }
   0x3   :  { %s34_s10 = sshll.u32 %s530_s30, 4  ;;  %s22_s12 = sshll.u32 %s531_s11, 4  ;;  %s35_s10 = int_to_ptr.vmem [resolvable:$true] %s34_s10  ;;  %s23_s12 = int_to_ptr.vmem [resolvable:$true] %s22_s12 }
   0x4   :  { %s452_s13 = scalar_lea.vmem %s35_s10, 512  ;;  %p457_p1 = scmp.lt.s32.totalorder %s35_s10, %s35_s10 }
   0x5   :  { %p453_p0 = scmp.ne.s32.totalorder %s35_s10, %s452_s13  ;;  %p458_p2 = scmp.lt.s32.totalorder %s452_s13, %s452_s13 }
   0x7   :  { %p459_p3 = por %p458_p2, %p457_p1 }
   0x9   :  { %p460_p4 = pnand %p459_p3, %p453_p0 }
   0xb   :  { %463 = shalt.err (!%p460_p4)
}
   0xc   :  { %s532_s14 = smov 128   ;;  %s533_s15 = smov 8  }
   0xd   :  { %40 = dma.hbm_to_vmem [thread:$0]  %s651_s1, 512, %s35_s10, [#allocation6], %s532_s14, %s532_s14, %s533_s15  }
   0xe   :  { %s472_s18 = scalar_lea.vmem %s23_s12, 256  ;;  %p477_p6 = scmp.lt.s32.totalorder %s23_s12, %s23_s12 }
   0xf   :  { %p473_p5 = scmp.ne.s32.totalorder %s23_s12, %s472_s18  ;;  %p478_p7 = scmp.lt.s32.totalorder %s472_s18, %s472_s18 }
  0x11   :  { %p479_p8 = por %p478_p7, %p477_p6 }
  0x13   :  { %p480_p9 = pnand %p479_p8, %p473_p5 }
  0x15   :  { %483 = shalt.err (!%p480_p9)
}
  0x16   :  { %28 = dma.hbm_to_vmem [thread:$0]  %s650_s0, 256, %s23_s12, [#allocation3], %s532_s14, %s532_s14, %s533_s15  }
  0x17   :  { %s534_s21 = smov [#allocation7]  }
  0x18   :  { %s52_s22 = sshll.u32 %s534_s21, 4  ;;  %s53_s22 = int_to_ptr.vmem [resolvable:$true] %s52_s22 }
  0x19   :  { %s492_s23 = scalar_lea.vmem %s53_s22, 512  ;;  %p497_p11 = scmp.lt.s32.totalorder %s53_s22, %s53_s22 }
  0x1a   :  { %p493_p10 = scmp.ne.s32.totalorder %s53_s22, %s492_s23  ;;  %p498_p12 = scmp.lt.s32.totalorder %s492_s23, %s492_s23 }
  0x1c   :  { %p499_p13 = por %p498_p12, %p497_p11 }
  0x1e   :  { %p500_p0 = pnand %p499_p13, %p493_p10 }
  0x20   :  { %503 = shalt.err (!%p500_p0)
}
  0x21   :  { %58 = dma.hbm_to_vmem [thread:$0]  %s655_s5, 512, %s53_s22, [#allocation6], %s532_s14, %s532_s14, %s533_s15  }
  0x22   :  { %524 = dma.done.wait [#allocation3], 256  }
  0x23   :  { %525 = vsyncadd [#allocation3], 4294967040 }
  0x24   :  { %526 = dma.done.wait [#allocation6], 1024  }
  0x25   :  { %527 = vsyncadd [#allocation6], 4294966272  ;;  %vm87_vm0 = vcmask 261120   ;;  %v79_v0 = vld [vmem:[#allocation5 + $0x18] sm:$0xff]  ;;  %v78_v1 = vld [vmem:[#allocation5 + $0x10] sm:$0xff]  ;;  %s535_s10 = smov [#allocation8]  }
  0x26   :  { %404 = vmatprep.subr.mxu0 %v79_v0  ;;  %v604_v2 = vld [vmem:[#allocation2] sm:$0xff]  ;;  %v77_v3 = vld [vmem:[#allocation5 + $0x8] sm:$0xff]  ;;  %v76_v4 = vld [vmem:[#allocation5] sm:$0xff]  ;;  %s369_s11 = sshll.u32 %s535_s10, 4  ;;  %s370_s11 = int_to_ptr.vmem [resolvable:$true] %s369_s11 }
  0x27   :  { %405 = vmatpush3.msra.mxu0 %v79_v0  ;;  %412 = vmatprep.mubr.msk.f32.mxu0 %vm87_vm0, %v604_v2  ;;  %v608_v5 = vld [vmem:[#allocation2 + $0x8] sm:$0xff]  ;;  %v382_v7 = vld [vmem:[%s652_s2] ss:$0 sm:$0xff]  ;;  %v225_v25 = vld [vmem:[#allocation7 + $0x8] sm:$0xff]  ;;  %p509_p2 = scmp.lt.s32.totalorder %s370_s11, %s370_s11 }
  0x28   :  { %406 = vmatprep.subr.mxu0 %v78_v1  ;;  %v227_v23 = vld [vmem:[#allocation7 + $0x18] sm:$0xff]  ;;  %v226_v24 = vld [vmem:[#allocation7 + $0x10] sm:$0xff]  ;;  %v224_v26 = vld [vmem:[#allocation7] sm:$0xff] }
  0x29   :  { %407 = vmatpush3.msra.mxu0 %v78_v1  ;;  %415 = vmatprep.subr.mxu1 %v227_v23  ;;  %v385_v34 = vld [vmem:[%s653_s3] ss:$0 sm:$0xff] }
  0x2a   :  { %408 = vmatprep.subr.mxu0 %v77_v3  ;;  %416 = vmatpush3.msra.mxu1 %v227_v23  ;;  %v386_v36 = vld [vmem:[%s654_s4] ss:$0 sm:$0xff] }
  0x2b   :  { %409 = vmatpush3.msra.mxu0 %v77_v3  ;;  %417 = vmatprep.subr.mxu1 %v226_v24  ;;  %v387_v53 = vld [vmem:[%s656_s6] ss:$0 sm:$0xff] }
  0x2c   :  { %410 = vmatprep.subr.mxu0 %v76_v4  ;;  %418 = vmatpush3.msra.mxu1 %v226_v24 }
  0x2d   :  { %411 = vmatpush3.msra.mxu0 %v76_v4  ;;  %419 = vmatprep.subr.mxu1 %v225_v25 }
  0x2e   :  { %413 = vmatmul.mubr.msk.f32.vlgmr.msra.gmra.mxu0 %vm87_vm0, %v608_v5  ;;  %420 = vmatpush3.msra.mxu1 %v225_v25 }
  0x2f   :  { %421 = vmatprep.subr.mxu1 %v224_v26 }
  0x30   :  { %422 = vmatpush3.msra.mxu1 %v224_v26 }
  0xee   :  { %v414_v6 = vpop.f32.mrf.mxu0 }
  0xef   :  { %v166_v10 = vadd.f32 %v414_v6, %v382_v7 }
  0xf0   :  { %v160_v8 = vpop.f32.mrf.mxu0 }
  0xf1   :  { %v161_v9 = vadd.f32 %v382_v7, %v160_v8  ;;  %v174_v12 = vsel %vm87_vm0, %v166_v10, 0.0 }
  0xf3   :  { %v171_v11 = vsel %vm87_vm0, %v161_v9, 0.0 }
  0xf4   :  { %172 = vadd.xlane.f32.xlu0 %v171_v11 }
  0xf8   :  { %175 = vadd.xlane.f32.xlu0 %v174_v12 }
 0x17d   :  { %v173_v13 = vpop.xlane.xlu0 %172 }
 0x17e   :  { %v178_v14 = vmul.f32 0.03125, %v173_v13 }
 0x180   :  { %v180_v15 = vsub.f32 %v161_v9, %v178_v14 }
 0x181   :  { %v176_v16 = vpop.xlane.xlu0 %175 }
 0x182   :  { %v179_v17 = vmul.f32 0.03125, %v176_v16  ;;  %v182_v18 = vmul.f32 %v180_v15, %v180_v15 }
 0x184   :  { %v181_v19 = vsub.f32 %v166_v10, %v179_v17  ;;  %v184_v20 = vsel %vm87_vm0, %v182_v18, 0.0  ;;  %v391_v18 = vld [vmem:[%s658_s8] ss:$0 sm:$0xff] }
 0x185   :  { %185 = vadd.xlane.f32.xlu1 %v184_v20 }
 0x186   :  { %v183_v21 = vmul.f32 %v181_v19, %v181_v19 }
 0x188   :  { %v187_v22 = vsel %vm87_vm0, %v183_v21, 0.0 }
 0x189   :  { %188 = vadd.xlane.f32.xlu1 %v187_v22 }
 0x20e   :  { %v186_v27 = vpop.xlane.xlu1 %185 }
 0x20f   :  { %v190_v28 = vmul.f32 0.03125, %v186_v27 }
 0x211   :  { %v192_v29 = vadd.f32 1e-05, %v190_v28 }
 0x212   :  { %v189_v30 = vpop.xlane.xlu1 %188 }
 0x213   :  { %432 = vrsqrt.f32 %v192_v29  ;;  %v191_v31 = vmul.f32 0.03125, %v189_v30 }
 0x215   :  { %v193_v32 = vadd.f32 1e-05, %v191_v31 }
 0x217   :  { %434 = vrsqrt.f32 %v193_v32 }
 0x220   :  { %v433_v33 = vpop.eup %432 }
 0x221   :  { %v196_v35 = vmul.f32 %v433_v33, %v180_v15  ;;  %v390_v15 = vld [vmem:[%s657_s7] ss:$0 sm:$0xff]  ;;  %s504_s7 = scalar_lea.vmem %s370_s11, 256 }
 0x222   :  { %p505_p1 = scmp.ne.s32.totalorder %s370_s11, %s504_s7  ;;  %p510_p3 = scmp.lt.s32.totalorder %s504_s7, %s504_s7 }
 0x223   :  { %v204_v37 = vmul.f32 %v385_v34, %v196_v35 }
 0x224   :  { %v435_v38 = vpop.eup %434  ;;  %p511_p4 = por %p510_p3, %p509_p2 }
 0x225   :  { %v197_v39 = vmul.f32 %v435_v38, %v181_v19  ;;  %v212_v40 = vadd.f32 %v386_v36, %v204_v37 }
 0x226   :  { %p512_p5 = pnand %p511_p4, %p505_p1 }
 0x227   :  { %v205_v41 = vmul.f32 %v385_v34, %v197_v39  ;;  %v216_v42 = vmul.f32 0.70710677, %v212_v40  ;;  %v214_v46 = vmul.f32 0.5, %v212_v40 }
 0x229   :  { %v213_v43 = vadd.f32 %v386_v36, %v205_v41  ;;  %436 = verf.f32 %v216_v42 }
 0x22b   :  { %v217_v44 = vmul.f32 0.70710677, %v213_v43  ;;  %v215_v50 = vmul.f32 0.5, %v213_v43 }
 0x22d   :  { %438 = verf.f32 %v217_v44 }
 0x236   :  { %v437_v45 = vpop.eup %436 }
 0x237   :  { %v220_v47 = vadd.f32 1.0, %v437_v45 }
 0x239   :  { %v222_v48 = vmul.f32 %v220_v47, %v214_v46 }
 0x23a   :  { %v439_v49 = vpop.eup %438 }
 0x23b   :  { %423 = vmatprep.mubr.msk.f32.mxu1 %vm87_vm0, %v222_v48  ;;  %v221_v51 = vadd.f32 1.0, %v439_v49 }
 0x23d   :  { %v223_v52 = vmul.f32 %v221_v51, %v215_v50 }
 0x23f   :  { %424 = vmatmul.mubr.msk.f32.vlgmr.msra.gmra.mxu1 %vm87_vm0, %v223_v52 }
 0x2ff   :  { %v425_v54 = vpop.f32.mrf.mxu1 }
 0x300   :  { %v313_v55 = vadd.f32 %v425_v54, %v387_v53 }
 0x301   :  { %v307_v56 = vpop.f32.mrf.mxu1 }
 0x302   :  { %v308_v57 = vadd.f32 %v387_v53, %v307_v56  ;;  %v321_v58 = vsel %vm87_vm0, %v313_v55, 0.0 }
 0x303   :  { %322 = vadd.xlane.f32.xlu1 %v321_v58 }
 0x304   :  { %v318_v59 = vsel %vm87_vm0, %v308_v57, 0.0 }
 0x305   :  { %319 = vadd.xlane.f32.xlu0 %v318_v59 }
 0x38c   :  { %v323_v60 = vpop.xlane.xlu1 %322 }
 0x38d   :  { %v325_v61 = vmul.f32 0.03125, %v323_v60 }
 0x38e   :  { %v320_v62 = vpop.xlane.xlu0 %319 }
 0x38f   :  { %v327_v63 = vsub.f32 %v313_v55, %v325_v61  ;;  %v324_v0 = vmul.f32 0.03125, %v320_v62 }
 0x391   :  { %v326_v1 = vsub.f32 %v308_v57, %v324_v0  ;;  %v329_v3 = vmul.f32 %v327_v63, %v327_v63 }
 0x393   :  { %v333_v4 = vsel %vm87_vm0, %v329_v3, 0.0  ;;  %v328_v6 = vmul.f32 %v326_v1, %v326_v1 }
 0x394   :  { %334 = vadd.xlane.f32.xlu1 %v333_v4 }
 0x395   :  { %v330_v7 = vsel %vm87_vm0, %v328_v6, 0.0 }
 0x396   :  { %331 = vadd.xlane.f32.xlu0 %v330_v7 }
 0x41d   :  { %v335_v8 = vpop.xlane.xlu1 %334 }
 0x41e   :  { %v337_v9 = vmul.f32 0.03125, %v335_v8 }
 0x41f   :  { %v332_v10 = vpop.xlane.xlu0 %331 }
 0x420   :  { %v339_v11 = vadd.f32 1e-05, %v337_v9  ;;  %v336_v12 = vmul.f32 0.03125, %v332_v10 }
 0x422   :  { %440 = vrsqrt.f32 %v339_v11  ;;  %v338_v13 = vadd.f32 1e-05, %v336_v12 }
 0x424   :  { %442 = vrsqrt.f32 %v338_v13 }
 0x42f   :  { %v441_v14 = vpop.eup %440 }
 0x430   :  { %v343_v16 = vmul.f32 %v441_v14, %v327_v63 }
 0x431   :  { %v443_v17 = vpop.eup %442 }
 0x432   :  { %v342_v19 = vmul.f32 %v443_v17, %v326_v1  ;;  %v351_v20 = vmul.f32 %v390_v15, %v343_v16 }
 0x434   :  { %v350_v21 = vmul.f32 %v390_v15, %v342_v19  ;;  %v359_v22 = vadd.f32 %v391_v18, %v351_v20 }
 0x436   :  { %v358_v23 = vadd.f32 %v391_v18, %v350_v21  ;;  %v361_v24 = vadd.f32 %v359_v22, %v608_v5 }
 0x438   :  { %v360_v25 = vadd.f32 %v358_v23, %v604_v2  ;;  %363 = vst.msk [vmem:[#allocation8 + $0x8] sm:$0xff] %vm87_vm0, %v361_v24 }
 0x43a   :  { %362 = vst.msk [vmem:[#allocation8] sm:$0xff] %vm87_vm0, %v360_v25 }
 0x43b   :  { %515 = shalt.err (!%p512_p5)
}
 0x43c   :  { %375 = dma.vmem_to_hbm [thread:$0]  %s370_s11, 256, %s659_s9, [#allocation4], %s532_s14, %s532_s14, %s533_s15  }
 0x43d   :  { %528 = dma.done.wait [#allocation4], 256  }
 0x43e   :  { %529 = vsyncadd [#allocation4], 4294967040 }
 0x43f   :  { %379 = vsyncpa [#allocation3], 1 }
 0x440   :  { %380 = vsyncpa [#allocation6], 1 }
 0x441   :  { %381 = vsyncpa [#allocation4], 1 }

</bundles_post_ra>
